<compile_context>
chip_gen: v7x
topology: tpu7x:2x2x1
jax: 0.10.0
libtpu: 0.0.40
codegen_flags: <defaults>
</compile_context>

<pallas_src>
import math

import jax
import jax.numpy as jnp
from jax.experimental import pallas as pl
from jax.experimental.pallas import tpu as pltpu


def _round_up(x: int, m: int) -> int:
    return ((x + m - 1) // m) * m


def gru_cell_kernel(hx_ref, w_ref, h_ref, br_ref, bz_ref, out_ref, acc_ref):
    """Grid = (B tiles, N tiles, K tiles); K (reduction) is the last axis.

    hx_ref : (TB, TK) bf16   -- [r_prev | x] block
    w_ref  : (TK, TN) bf16   -- [W_r.T ; P_r.T] block
    h_ref  : (TB, TN) f32    -- r_prev block (for the gate blend)
    br_ref : (1, TN)  f32
    bz_ref : (1, TN)  f32
    out_ref: (TB, TN) f32
    acc_ref: (TB, TN) f32 VMEM scratch accumulator
    """
    k = pl.program_id(2)

    @pl.when(k == 0)
    def _():
        acc_ref[...] = jnp.zeros_like(acc_ref)

    # Fused matmul: r_prev @ W_r.T + x @ P_r.T  (bf16 in, f32 accumulate).
    acc_ref[...] += jnp.dot(
        hx_ref[...], w_ref[...], preferred_element_type=jnp.float32
    )

    @pl.when(k == pl.num_programs(2) - 1)
    def _():
        # z depends only on b_z -> compute once per output tile (epilogue).
        z = jax.nn.sigmoid(bz_ref[...])                     # (1, TN), f32
        pre = acc_ref[...] + br_ref[...]                    # f32
        out_ref[...] = (1.0 - z) * h_ref[...] + z * jnp.tanh(pre)


def gru_cell_forward(x, r_prev, W_r, P_r, b_r, b_z,
                     *, tb_max=256, tn_max=512, tk_max=1024):
    """x: (B, I) f32, r_prev: (B, H) f32, W_r: (H, H), P_r: (H, I),
    b_r: (H,), b_z: (H,). Returns r_t: (B, H) f32."""
    B, I = x.shape
    H = r_prev.shape[1]
    K = H + I

    # ---- padded, tile-aligned shapes -------------------------------------
    Bp = _round_up(B, 8)
    if Bp > tb_max:
        Bp = _round_up(B, tb_max)
    TB = min(Bp, tb_max)

    Np = _round_up(H, 128)
    if Np > tn_max:
        Np = _round_up(H, tn_max)
    TN = min(Np, tn_max)

    Kp = _round_up(K, 128)
    if Kp > tk_max:
        Kp = _round_up(K, tk_max)
    TK = min(Kp, tk_max)

    f32 = jnp.float32
    bf16 = jnp.bfloat16

    # ---- operand prep (fuse + pad + cast) --------------------------------
    # [r_prev | x] -> (Bp, Kp) bf16 ; [W_r.T ; P_r.T] -> (Kp, Np) bf16.
    hx = jnp.concatenate([r_prev, x], axis=1).astype(f32)           # (B, K)
    hx = jnp.pad(hx, ((0, Bp - B), (0, Kp - K))).astype(bf16)       # (Bp, Kp)

    w_stack = jnp.concatenate([W_r.T, P_r.T], axis=0).astype(f32)   # (K, H)
    w_stack = jnp.pad(w_stack, ((0, Kp - K), (0, Np - H))).astype(bf16)

    h_pad = jnp.pad(r_prev.astype(f32), ((0, Bp - B), (0, Np - H)))  # (Bp, Np)
    br_pad = jnp.pad(b_r.astype(f32), (0, Np - H)).reshape(1, Np)
    bz_pad = jnp.pad(b_z.astype(f32), (0, Np - H)).reshape(1, Np)

    grid = (Bp // TB, Np // TN, Kp // TK)

    out = pl.pallas_call(
        gru_cell_kernel,
        out_shape=jax.ShapeDtypeStruct((Bp, Np), f32),
        grid_spec=pltpu.PrefetchScalarGridSpec(
            num_scalar_prefetch=0,
            grid=grid,
            in_specs=[
                pl.BlockSpec((TB, TK), lambda i, j, k: (i, k)),   # hx
                pl.BlockSpec((TK, TN), lambda i, j, k: (k, j)),   # weights
                pl.BlockSpec((TB, TN), lambda i, j, k: (i, j)),   # r_prev
                pl.BlockSpec((1, TN), lambda i, j, k: (0, j)),    # b_r
                pl.BlockSpec((1, TN), lambda i, j, k: (0, j)),    # b_z
            ],
            out_specs=pl.BlockSpec((TB, TN), lambda i, j, k: (i, j)),
            scratch_shapes=[pltpu.VMEM((TB, TN), f32)],
        ),
        compiler_params=pltpu.CompilerParams(
            dimension_semantics=("parallel", "parallel", "arbitrary"),
        ),
    )(hx, w_stack, h_pad, br_pad, bz_pad)

    return out[:B, :H]


def gru_cell_reference(x, r_prev, W_r, P_r, b_r, b_z):
    z = jax.nn.sigmoid(b_z)
    pre = r_prev @ W_r.T + x @ P_r.T + b_r
    return (1.0 - z) * r_prev + z * jnp.tanh(pre)


if __name__ == "__main__":
    input_size = 16
    hidden_size = 32
    batch = 2

    key = jax.random.PRNGKey(0)
    k_wr, k_pr, k_br, k_bz, k_x, k_h = jax.random.split(key, 6)

    # Deterministic init matching nn.init.uniform_(-1/sqrt(H), 1/sqrt(H))
    mag = 1.0 / math.sqrt(hidden_size)
    W_r = jax.random.uniform(k_wr, (hidden_size, hidden_size), jnp.float32, -mag, mag)
    P_r = jax.random.uniform(k_pr, (hidden_size, input_size), jnp.float32, -mag, mag)
    b_r = jax.random.uniform(k_br, (hidden_size,), jnp.float32, -mag, mag)
    b_z = jax.random.uniform(k_bz, (hidden_size,), jnp.float32, -mag, mag)

    x = jax.random.normal(k_x, (batch, input_size), jnp.float32)
    r_prev = jax.random.normal(k_h, (batch, hidden_size), jnp.float32)

    r_t = gru_cell_forward(x, r_prev, W_r, P_r, b_r, b_z)
    jax.block_until_ready(r_t)

    r_ref = gru_cell_reference(x, r_prev, W_r, P_r, b_r, b_z)
    assert r_t.shape == (batch, hidden_size)
    # Tolerance loosened vs. pure-f32: MXU operands are bf16 (f32 accumulate).
    assert jnp.allclose(r_t, r_ref, atol=2e-2, rtol=2e-2), (
        "mismatch vs reference: max abs diff = "
        f"{float(jnp.max(jnp.abs(r_t - r_ref)))}"
    )

    print("KERNEL_OK")
</pallas_src>

<mosaic_0001>
module attributes {stable_mosaic.version = 11 : i64} {
  func.func @gru_cell_kernel(%arg0: i32, %arg1: i32, %arg2: i32, %arg3: memref<8x128xbf16, #tpu.memory_space<vmem>>, %arg4: memref<128x128xbf16, #tpu.memory_space<vmem>>, %arg5: memref<8x128xf32, #tpu.memory_space<vmem>>, %arg6: memref<1x128xf32, #tpu.memory_space<vmem>>, %arg7: memref<1x128xf32, #tpu.memory_space<vmem>>, %arg8: memref<8x128xf32, #tpu.memory_space<vmem>>, %arg9: memref<8x128xf32, #tpu.memory_space<vmem>>) attributes {dimension_semantics = [#tpu.dimension_semantics<parallel>, #tpu.dimension_semantics<parallel>, #tpu.dimension_semantics<arbitrary>], iteration_bounds = array<i64: 1, 1, 1>, scalar_prefetch = 0 : i64, scratch_operands = 1 : i64, tpu.core_type = #tpu.core_type<tc>, window_params = [{transform_indices = @transform_0, window_bounds = array<i64: 8, 128>}, {transform_indices = @transform_1, window_bounds = array<i64: 128, 128>}, {transform_indices = @transform_2, window_bounds = array<i64: 8, 128>}, {transform_indices = @transform_3, window_bounds = array<i64: 1, 128>}, {transform_indices = @transform_4, window_bounds = array<i64: 1, 128>}, {transform_indices = @transform_5, window_bounds = array<i64: 8, 128>}]} {
    %c0_i32 = arith.constant 0 : i32
    %0 = arith.cmpi eq, %arg2, %c0_i32 : i32
    %1 = arith.extui %0 : i1 to i32
    %c0_i32_0 = arith.constant 0 : i32
    %2 = arith.cmpi ne, %1, %c0_i32_0 : i32
    scf.if %2 {
      %cst_10 = arith.constant 0.000000e+00 : f32
      %12 = vector.broadcast %cst_10 : f32 to vector<8x128xf32>
      %c0_11 = arith.constant 0 : index
      %c0_12 = arith.constant 0 : index
      %13 = vector.load %arg9[%c0_11, %c0_12] : memref<8x128xf32, #tpu.memory_space<vmem>>, vector<8x128xf32>
      tpu.vector_store %arg9[%c0_11, %c0_12], %12 {strides = array<i32>} : memref<8x128xf32, #tpu.memory_space<vmem>>, vector<8x128xf32>,
    } else {
    }
    %c0 = arith.constant 0 : index
    %c0_1 = arith.constant 0 : index
    %3 = vector.load %arg9[%c0, %c0_1] : memref<8x128xf32, #tpu.memory_space<vmem>>, vector<8x128xf32>
    %c0_2 = arith.constant 0 : index
    %c0_3 = arith.constant 0 : index
    %4 = vector.load %arg3[%c0_2, %c0_3] : memref<8x128xbf16, #tpu.memory_space<vmem>>, vector<8x128xbf16>
    %c0_4 = arith.constant 0 : index
    %c0_5 = arith.constant 0 : index
    %5 = vector.load %arg4[%c0_4, %c0_5] : memref<128x128xbf16, #tpu.memory_space<vmem>>, vector<128x128xbf16>
    %cst = arith.constant dense<0.000000e+00> : vector<8x128xf32>
    %6 = tpu.matmul %4, %5, %cst {dimension_numbers = #tpu.dot_dimension_numbers<[1], [0], [0], [1], [0, 0, 1, 1], [], []>} : vector<8x128xbf16>, vector<128x128xbf16>, vector<8x128xf32> -> vector<8x128xf32>
    %7 = arith.addf %3, %6 : vector<8x128xf32>
    %c0_6 = arith.constant 0 : index
    %c0_7 = arith.constant 0 : index
    %8 = vector.load %arg9[%c0_6, %c0_7] : memref<8x128xf32, #tpu.memory_space<vmem>>, vector<8x128xf32>
    tpu.vector_store %arg9[%c0_6, %c0_7], %7 {strides = array<i32>} : memref<8x128xf32, #tpu.memory_space<vmem>>, vector<8x128xf32>,
    %c0_i32_8 = arith.constant 0 : i32
    %9 = arith.cmpi eq, %arg2, %c0_i32_8 : i32
    %10 = arith.extui %9 : i1 to i32
    %c0_i32_9 = arith.constant 0 : i32
    %11 = arith.cmpi ne, %10, %c0_i32_9 : i32
    scf.if %11 {
      %c0_10 = arith.constant 0 : index
      %c0_11 = arith.constant 0 : index
      %12 = vector.load %arg7[%c0_10, %c0_11] : memref<1x128xf32, #tpu.memory_space<vmem>>, vector<1x128xf32>
      %13 = arith.negf %12 : vector<1x128xf32>
      %14 = math.exp %13 : vector<1x128xf32>
      %cst_12 = arith.constant 1.000000e+00 : f32
      %15 = vector.broadcast %cst_12 : f32 to vector<1x128xf32>
      %16 = arith.addf %15, %14 : vector<1x128xf32>
      %17 = arith.divf %15, %16 : vector<1x128xf32>
      %c0_13 = arith.constant 0 : index
      %c0_14 = arith.constant 0 : index
      %18 = vector.load %arg9[%c0_13, %c0_14] : memref<8x128xf32, #tpu.memory_space<vmem>>, vector<8x128xf32>
      %c0_15 = arith.constant 0 : index
      %c0_16 = arith.constant 0 : index
      %19 = vector.load %arg6[%c0_15, %c0_16] : memref<1x128xf32, #tpu.memory_space<vmem>>, vector<1x128xf32>
      %20 = vector.broadcast %19 : vector<1x128xf32> to vector<8x128xf32>
      %21 = arith.addf %18, %20 : vector<8x128xf32>
      %cst_17 = arith.constant 1.000000e+00 : f32
      %22 = vector.broadcast %cst_17 : f32 to vector<1x128xf32>
      %23 = arith.subf %22, %17 : vector<1x128xf32>
      %c0_18 = arith.constant 0 : index
      %c0_19 = arith.constant 0 : index
      %24 = vector.load %arg5[%c0_18, %c0_19] : memref<8x128xf32, #tpu.memory_space<vmem>>, vector<8x128xf32>
      %25 = vector.broadcast %23 : vector<1x128xf32> to vector<8x128xf32>
      %26 = arith.mulf %25, %24 : vector<8x128xf32>
      %27 = math.tanh %21 : vector<8x128xf32>
      %28 = vector.broadcast %17 : vector<1x128xf32> to vector<8x128xf32>
      %29 = arith.mulf %28, %27 : vector<8x128xf32>
      %30 = arith.addf %26, %29 : vector<8x128xf32>
      %c0_20 = arith.constant 0 : index
      %c0_21 = arith.constant 0 : index
      %31 = vector.load %arg8[%c0_20, %c0_21] : memref<8x128xf32, #tpu.memory_space<vmem>>, vector<8x128xf32>
      tpu.vector_store %arg8[%c0_20, %c0_21], %30 {strides = array<i32>} : memref<8x128xf32, #tpu.memory_space<vmem>>, vector<8x128xf32>,
    } else {
    }
    return
  }
  func.func @transform_0(%arg0: i32, %arg1: i32, %arg2: i32) -> (i32, i32) {
    %c0_i32 = arith.constant 0 : i32
    return %arg0, %arg2 : i32, i32
  }
  func.func @transform_1(%arg0: i32, %arg1: i32, %arg2: i32) -> (i32, i32) {
    %c0_i32 = arith.constant 0 : i32
    return %arg2, %arg1 : i32, i32
  }
  func.func @transform_2(%arg0: i32, %arg1: i32, %arg2: i32) -> (i32, i32) {
    %c0_i32 = arith.constant 0 : i32
    return %arg0, %arg1 : i32, i32
  }
  func.func @transform_3(%arg0: i32, %arg1: i32, %arg2: i32) -> (i32, i32) {
    %c0_i32 = arith.constant 0 : i32
    %c0_i32_0 = arith.constant 0 : i32
    return %c0_i32, %arg1 : i32, i32
  }
  func.func @transform_4(%arg0: i32, %arg1: i32, %arg2: i32) -> (i32, i32) {
    %c0_i32 = arith.constant 0 : i32
    %c0_i32_0 = arith.constant 0 : i32
    return %c0_i32, %arg1 : i32, i32
  }
  func.func @transform_5(%arg0: i32, %arg1: i32, %arg2: i32) -> (i32, i32) {
    %c0_i32 = arith.constant 0 : i32
    return %arg0, %arg1 : i32, i32
  }
}

</mosaic_0001>

<bundles_post_ra>
// kernel: tpu_custom_call.1
= control target key start
LH: loop header
LB: loop body
LE: loop exit
PB: predicated region body
PF: predicated region fallthrough
CT: control target
= control target key end

     0   :  { %10 = vsyncpa [#allocation4], 0  ;;  %s473_s0 = inlined_call_operand.hbm [shape: bf16[8,128], index: 0, kind: input, shape index: {}]   ;;  %s474_s1 = inlined_call_operand.hbm [shape: bf16[128,128], index: 1, kind: input, shape index: {}]   ;;  %s475_s2 = inlined_call_operand.hbm [shape: f32[8,128], index: 2, kind: input, shape index: {}]   ;;  %s476_s3 = inlined_call_operand.vmem [shape: f32[1,128], index: 3, kind: input, shape index: {}]   ;;  %s477_s4 = inlined_call_operand.vmem [shape: f32[1,128], index: 4, kind: input, shape index: {}]   ;;  %s478_s5 = inlined_call_operand.hbm [shape: f32[8,128], index: 5, kind: output, shape index: {}]  }
   0x1   :  { %11 = vsyncpa [#allocation7], 0 }
   0x2   :  { %12 = vsyncpa [#allocation5], 0  ;;  %s381_s18 = smov [#allocation6]   ;;  %s287_s22 = scalar_lea.hbm %s474_s1, 1024 }
   0x3   :  { %s28_s19 = sshll.u32 %s381_s18, 4  ;;  %p288_p0 = scmp.ne.s32.totalorder %s474_s1, %s287_s22  ;;  %s29_s19 = int_to_ptr.vmem [resolvable:$true] %s28_s19 }
   0x4   :  { %p291_p1 = scmp.lt.u32.totalorder %s287_s22, %s474_s1 }
   0x6   :  { %p293_p2 = pnand %p291_p1, %p288_p0 }
   0x8   :  { %296 = shalt.err (!%p293_p2)
}
   0x9   :  { %s297_s27 = scalar_lea.vmem %s29_s19, 1024  ;;  %p302_p4 = scmp.lt.s32.totalorder %s29_s19, %s29_s19 }
   0xa   :  { %p298_p3 = scmp.ne.s32.totalorder %s29_s19, %s297_s27  ;;  %p303_p5 = scmp.lt.s32.totalorder %s297_s27, %s297_s27 }
   0xc   :  { %p304_p6 = por %p303_p5, %p302_p4 }
   0xe   :  { %p305_p7 = pnand %p304_p6, %p298_p3 }
  0x10   :  { %308 = shalt.err (!%p305_p7)
}
  0x11   :  { %s382_s28 = smov 64   ;;  %s383_s29 = smov 4  }
  0x12   :  { %34 = dma.hbm_to_vmem [thread:$0]  %s474_s1, 1024, %s29_s19, [#allocation7], %s382_s28, %s382_s28, %s383_s29  }
  0x13   :  { %s384_s7 = smov [#allocation3]   ;;  %s385_s9 = smov [#allocation8]  }
  0x14   :  { %s19_s8 = sshll.u32 %s384_s7, 4  ;;  %s41_s10 = sshll.u32 %s385_s9, 4  ;;  %s20_s8 = int_to_ptr.vmem [resolvable:$true] %s19_s8  ;;  %s42_s10 = int_to_ptr.vmem [resolvable:$true] %s41_s10 }
  0x15   :  { %s309_s13 = scalar_lea.hbm %s473_s0, 64 }
  0x16   :  { %p310_p8 = scmp.ne.s32.totalorder %s473_s0, %s309_s13  ;;  %p313_p9 = scmp.lt.u32.totalorder %s309_s13, %s473_s0 }
  0x18   :  { %p315_p10 = pnand %p313_p9, %p310_p8 }
  0x1a   :  { %318 = shalt.err (!%p315_p10)
}
  0x1b   :  { %s319_s1 = scalar_lea.vmem %s20_s8, 64  ;;  %p324_p12 = scmp.lt.s32.totalorder %s20_s8, %s20_s8 }
  0x1c   :  { %p320_p11 = scmp.ne.s32.totalorder %s20_s8, %s319_s1  ;;  %p325_p13 = scmp.lt.s32.totalorder %s319_s1, %s319_s1 }
  0x1e   :  { %p326_p0 = por %p325_p13, %p324_p12 }
  0x20   :  { %p327_p1 = pnand %p326_p0, %p320_p11 }
  0x22   :  { %330 = shalt.err (!%p327_p1)
}
  0x23   :  { %22 = dma.hbm_to_vmem [thread:$0]  %s473_s0, 64, %s20_s8, [#allocation4]  }
  0x24   :  { %s331_s22 = scalar_lea.hbm %s475_s2, 128 }
  0x25   :  { %p332_p2 = scmp.ne.s32.totalorder %s475_s2, %s331_s22  ;;  %p335_p3 = scmp.lt.u32.totalorder %s331_s22, %s475_s2 }
  0x27   :  { %p337_p4 = pnand %p335_p3, %p332_p2 }
  0x29   :  { %340 = shalt.err (!%p337_p4)
}
  0x2a   :  { %s341_s27 = scalar_lea.vmem %s42_s10, 128  ;;  %p346_p6 = scmp.lt.s32.totalorder %s42_s10, %s42_s10 }
  0x2b   :  { %p342_p5 = scmp.ne.s32.totalorder %s42_s10, %s341_s27  ;;  %p347_p7 = scmp.lt.s32.totalorder %s341_s27, %s341_s27 }
  0x2d   :  { %p348_p8 = por %p347_p7, %p346_p6 }
  0x2f   :  { %p349_p9 = pnand %p348_p8, %p342_p5 }
  0x31   :  { %352 = shalt.err (!%p349_p9)
}
  0x32   :  { %44 = dma.hbm_to_vmem [thread:$0]  %s475_s2, 128, %s42_s10, [#allocation7]  }
  0x33   :  { %375 = dma.done.wait [#allocation4], 64  }
  0x34   :  { %376 = vsyncadd [#allocation4], 4294967232 }
  0x35   :  { %377 = dma.done.wait [#allocation7], 1152  }
  0x36   :  { %378 = vsyncadd [#allocation7], 4294966144  ;;  %v386_v0 = vmov 0.0   ;;  %vm387_vm0 = vmmov 0   ;;  %v273_v1 = vld [vmem:[#allocation6] sm:$0xff]   ;;  %v274_v2 = vld [vmem:[#allocation6 + $0x8] sm:$0xff]   ;;  %v194_v14 = vlaneseq }
  0x37   :  { %245 = vmatprep.subr.bf16.mxu0 %v386_v0  ;;  %261 = vmatprep.mubr.msk.bf16.mxu0 %vm387_vm0, %v386_v0  ;;  %v275_v3 = vld [vmem:[#allocation6 + $0x10] sm:$0xff]   ;;  %v276_v4 = vld [vmem:[#allocation6 + $0x18] sm:$0xff]   ;;  %v277_v5 = vld [vmem:[#allocation6 + $0x20] sm:$0xff]  }
  0x38   :  { %246 = vmatpush3.bf16.msra.mxu0 %v273_v1  ;;  %v278_v6 = vld [vmem:[#allocation6 + $0x28] sm:$0xff]   ;;  %v279_v7 = vld [vmem:[#allocation6 + $0x30] sm:$0xff]   ;;  %v280_v8 = vld [vmem:[#allocation6 + $0x38] sm:$0xff]   ;;  %v195_v17 = vshrl.u32 %v194_v14, 7 }
  0x39   :  { %247 = vmatprep.subr.bf16.mxu0 %v386_v0  ;;  %v65_v9 = vld [vmem:[#allocation3] sm:$0xf]  ;;  %v192_v26 = vld [vmem:[#allocation8] sm:$0xff] }
  0x3a   :  { %v175_v10 = vld [vmem:[%s477_s4] sm:$0x1]  ;;  %v196_v24 = vsub.s32 0, %v195_v17  ;;  %s388_s4 = smov [#allocation9]  }
  0x3b   :  { %v234_v11 = vmul.f32 -1.442695, %v175_v10  ;;  %v235_v15 = vld [vmem:[%s476_s3] ss:$0 sm:$0xff]  ;;  %s216_s7 = sshll.u32 %s388_s4, 4  ;;  %s217_s7 = int_to_ptr.vmem [resolvable:$true] %s216_s7 }
  0x3c   :  { %248 = vmatpush3.bf16.msra.mxu0 %v274_v2  ;;  %s353_s3 = scalar_lea.vmem %s217_s7, 128  ;;  %p358_p11 = scmp.lt.s32.totalorder %s217_s7, %s217_s7 }
  0x3d   :  { %249 = vmatprep.subr.bf16.mxu0 %v386_v0  ;;  %281 = vpow2.f32 %v234_v11  ;;  %p354_p10 = scmp.ne.s32.totalorder %s217_s7, %s353_s3  ;;  %p359_p12 = scmp.lt.s32.totalorder %s353_s3, %s353_s3 }
  0x3f   :  { %p360_p13 = por %p359_p12, %p358_p11 }
  0x40   :  { %250 = vmatpush3.bf16.msra.mxu0 %v275_v3 }
  0x41   :  { %251 = vmatprep.subr.bf16.mxu0 %v386_v0  ;;  %p361_p0 = pnand %p360_p13, %p354_p10 }
  0x44   :  { %252 = vmatpush3.bf16.msra.mxu0 %v276_v4 }
  0x45   :  { %253 = vmatprep.subr.bf16.mxu0 %v386_v0 }
  0x47   :  { %v282_v12 = vpop.eup %281 }
  0x48   :  { %254 = vmatpush3.bf16.msra.mxu0 %v277_v5  ;;  %v179_v13 = vadd.f32 1.0, %v282_v12 }
  0x49   :  { %255 = vmatprep.subr.bf16.mxu0 %v386_v0 }
  0x4a   :  { %283 = vrcp.f32 %v179_v13 }
  0x4c   :  { %256 = vmatpush3.bf16.msra.mxu0 %v278_v6 }
  0x4d   :  { %257 = vmatprep.subr.bf16.mxu0 %v386_v0 }
  0x50   :  { %258 = vmatpush3.bf16.msra.mxu0 %v279_v7 }
  0x51   :  { %259 = vmatprep.subr.bf16.mxu0 %v386_v0 }
  0x54   :  { %260 = vmatpush3.bf16.msra.mxu0 %v280_v8  ;;  %v284_v18 = vpop.eup %283 }
  0x55   :  { %v191_v23 = vsub.f32 1.0, %v284_v18  ;;  %v205_v27 = vrot.slane %v284_v18, %v196_v24 }
  0x57   :  { %262 = vmatmul.mubr.bf16.vlgmr.msra.gmra.mrb[0].mxu0 %v65_v9  ;;  %v197_v25 = vrot.slane %v191_v23, %v196_v24 }
  0x59   :  { %v199_v28 = vmul.f32 %v197_v25, %v192_v26 }
 0x12a   :  { %v164_v16 = vpop.f32.mrb[0].mxu0 }
 0x12b   :  { %v190_v19 = vadd.f32 %v235_v15, %v164_v16  ;;  %v263_v20 = vpop.f32.mrb[1].mxu0 }
 0x12c   :  { %v167_v21 = vpop.f32.mrb[2].mxu0 }
 0x12d   :  { %285 = vtanh.f32 %v190_v19  ;;  %v264_v22 = vpop.f32.mrb[3].mxu0 }
 0x137   :  { %v286_v29 = vpop.eup %285 }
 0x138   :  { %v207_v30 = vmul.f32 %v286_v29, %v205_v27 }
 0x13a   :  { %v208_v31 = vadd.f32 %v207_v30, %v199_v28 }
 0x13c   :  { %209 = vst [vmem:[#allocation9] sm:$0xff] %v208_v31 }
 0x13d   :  { %364 = shalt.err (!%p361_p0)
}
 0x13e   :  { %s365_s10 = scalar_lea.hbm %s478_s5, 128 }
 0x13f   :  { %p366_p1 = scmp.ne.s32.totalorder %s478_s5, %s365_s10  ;;  %p369_p2 = scmp.lt.u32.totalorder %s365_s10, %s478_s5 }
 0x141   :  { %p371_p3 = pnand %p369_p2, %p366_p1 }
 0x143   :  { %374 = shalt.err (!%p371_p3)
}
 0x144   :  { %219 = dma.vmem_to_hbm [thread:$0]  %s217_s7, 128, %s478_s5, [#allocation5]  }
 0x145   :  { %379 = dma.done.wait [#allocation5], 128  }
 0x146   :  { %380 = vsyncadd [#allocation5], 4294967168 }
 0x147   :  { %223 = vsyncpa [#allocation4], 1 }
 0x148   :  { %224 = vsyncpa [#allocation7], 1 }
 0x149   :  { %225 = vsyncpa [#allocation5], 1 }

</bundles_post_ra>
